<compile_context>
chip_gen: v5e
topology: v5e:2x2
jax: 0.10.0
libtpu: 0.0.40
codegen_flags: <defaults>
</compile_context>

<pallas_src>
import functools

import jax
import jax.numpy as jnp
from jax import lax
from jax.experimental import pallas as pl
from jax.experimental.pallas import tpu as pltpu

KH, KW = 3, 3
BN_EPS = 1e-5


def conv_bn_relu_kernel(patches_ref, w_ref, gb_ref, out_ref,
                        sum_ref, sumsq_ref, scale_ref, shift_ref, *, inv_n):
    # patches_ref: (Kp, T)      lane-dense column tile of the im2col slab
    # w_ref:       (Cout, Kp)   conv weights, K-major matching patches
    # gb_ref:      (Cout, 2)    [:, 0] = gamma, [:, 1] = beta
    # out_ref:     (Cout, T)    lane-dense output tile
    phase = pl.program_id(0)   # 0: conv + BN stats accumulation, 1: normalize+ReLU
    tile = pl.program_id(1)

    # Single K-contraction on the MXU (replaces 9 accumulated K=Cin dots).
    conv = jnp.dot(w_ref[...], patches_ref[...],
                   preferred_element_type=jnp.float32)
    # Conv bias intentionally omitted: it cancels under training-mode BN.

    @pl.when((phase == 0) & (tile == 0))
    def _():
        sum_ref[...] = jnp.zeros_like(sum_ref)
        sumsq_ref[...] = jnp.zeros_like(sumsq_ref)

    @pl.when(phase == 0)
    def _():
        sum_ref[...] += jnp.sum(conv, axis=1, keepdims=True)
        sumsq_ref[...] += jnp.sum(conv * conv, axis=1, keepdims=True)
        out_ref[...] = conv   # placeholder write; overwritten in phase 1

    @pl.when((phase == 1) & (tile == 0))
    def _():
        # Finalize BN stats once (biased batch variance, like PyTorch forward).
        mean = sum_ref[...] * inv_n
        var = sumsq_ref[...] * inv_n - mean * mean
        inv_std = lax.rsqrt(var + BN_EPS)
        scale = gb_ref[:, 0:1] * inv_std            # gamma / sqrt(var + eps)
        scale_ref[...] = scale
        shift_ref[...] = gb_ref[:, 1:2] - mean * scale   # beta - mean*scale

    @pl.when(phase == 1)
    def _():
        out_ref[...] = jnp.maximum(scale_ref[...] * conv + shift_ref[...], 0.0)


def conv_block_forward(x_nchw, w_oihw, bias, gamma, beta, *, tile=256):
    N, Cin, H, W = x_nchw.shape
    Cout = w_oihw.shape[0]
    NHW = N * H * W
    KK = KH * KW
    K = KK * Cin
    Kp = -(-K // 8) * 8            # pad contraction dim to a sublane multiple

    del bias  # exact cancellation under training-mode BatchNorm (mean subtraction)

    # im2col slab (K, N*H*W), built directly from NCHW (no NHWC round trip).
    x_pad = jnp.pad(x_nchw.astype(jnp.float32), ((0, 0), (0, 0), (1, 1), (1, 1)))
    taps = jnp.stack([x_pad[:, :, dh:dh + H, dw:dw + W]
                      for dh in range(KH) for dw in range(KW)], axis=0)  # (9,N,Cin,H,W)
    patches = taps.transpose(0, 2, 1, 3, 4).reshape(K, NHW)

    # Pad columns to a tile multiple. Zero patches give zero conv (no bias), so
    # they contribute nothing to the BN sums (which divide by the true NHW).
    nhw_pad = -(-NHW // tile) * tile
    patches = jnp.pad(patches, ((0, Kp - K), (0, nhw_pad - NHW)))
    num_tiles = nhw_pad // tile

    # (Cout, Cin, KH, KW) -> (Cout, KH*KW*Cin), K-ordering matching the patches.
    w_k = jnp.transpose(w_oihw.astype(jnp.float32), (0, 2, 3, 1)).reshape(Cout, K)
    w_k = jnp.pad(w_k, ((0, 0), (0, Kp - K)))
    gb = jnp.stack([gamma.astype(jnp.float32), beta.astype(jnp.float32)], axis=1)

    kernel = functools.partial(conv_bn_relu_kernel, inv_n=1.0 / float(NHW))

    out = pl.pallas_call(
        kernel,
        out_shape=jax.ShapeDtypeStruct((Cout, nhw_pad), jnp.float32),
        grid_spec=pltpu.PrefetchScalarGridSpec(
            num_scalar_prefetch=0,
            grid=(2, num_tiles),   # (phase, column tile) — both carry state
            in_specs=[
                pl.BlockSpec((Kp, tile), lambda p, t: (0, t)),      # patches
                pl.BlockSpec((Cout, Kp), lambda p, t: (0, 0)),      # weights
                pl.BlockSpec((Cout, 2), lambda p, t: (0, 0)),       # gamma/beta
            ],
            out_specs=pl.BlockSpec((Cout, tile), lambda p, t: (0, t)),
            scratch_shapes=[pltpu.VMEM((Cout, 1), jnp.float32)] * 4,
        ),
        compiler_params=pltpu.CompilerParams(
            dimension_semantics=("arbitrary", "arbitrary")),
    )(patches, w_k, gb)

    out = out[:, :NHW].reshape(Cout, N, H, W)
    # TODO(synk): emit NHWC end-to-end to drop this final transpose for mem-bound use.
    return jnp.transpose(out, (1, 0, 2, 3))  # back to NCHW


def conv_block_reference(x_nchw, w_oihw, bias, gamma, beta):
    # Pure-JAX reference mirroring the PyTorch forward (training-mode BN).
    conv = lax.conv_general_dilated(
        x_nchw.astype(jnp.float32), w_oihw.astype(jnp.float32),
        window_strides=(1, 1), padding=((1, 1), (1, 1)),
        dimension_numbers=("NCHW", "OIHW", "NCHW"))
    conv = conv + bias.reshape(1, -1, 1, 1)
    mean = jnp.mean(conv, axis=(0, 2, 3), keepdims=True)
    var = jnp.mean((conv - mean) ** 2, axis=(0, 2, 3), keepdims=True)
    y = gamma.reshape(1, -1, 1, 1) * (conv - mean) * lax.rsqrt(var + BN_EPS) \
        + beta.reshape(1, -1, 1, 1)
    return jnp.maximum(y, 0.0)


if __name__ == "__main__":
    # Small shapes consistent with the module: NCHW input, Cin=4 -> Cout=8.
    N, Cin, Cout, H, W = 2, 4, 8, 16, 16

    key = jax.random.PRNGKey(0)
    kx, kw, kb, kg, kbe = jax.random.split(key, 5)
    x = jax.random.normal(kx, (N, Cin, H, W), dtype=jnp.float32)

    # Deterministic synthetic parameters (shapes per nn.Conv2d / nn.BatchNorm2d).
    w = 0.1 * jax.random.normal(kw, (Cout, Cin, KH, KW), dtype=jnp.float32)
    b = 0.1 * jax.random.normal(kb, (Cout,), dtype=jnp.float32)
    gamma = 1.0 + 0.1 * jax.random.normal(kg, (Cout,), dtype=jnp.float32)
    beta = 0.1 * jax.random.normal(kbe, (Cout,), dtype=jnp.float32)

    out = conv_block_forward(x, w, b, gamma, beta)
    out = jax.block_until_ready(out)

    ref = conv_block_reference(x, w, b, gamma, beta)
    assert out.shape == (N, Cout, H, W)
    assert jnp.allclose(out, ref, rtol=1e-4, atol=1e-4), (
        float(jnp.max(jnp.abs(out - ref))))

    print("KERNEL_OK")
</pallas_src>

<mosaic_0001>
module attributes {stable_mosaic.version = 11 : i64} {
  func.func @conv_bn_relu_kernel(%arg0: i32, %arg1: i32, %arg2: memref<40x256xf32, #tpu.memory_space<vmem>>, %arg3: memref<8x40xf32, #tpu.memory_space<vmem>>, %arg4: memref<8x2xf32, #tpu.memory_space<vmem>>, %arg5: memref<8x256xf32, #tpu.memory_space<vmem>>, %arg6: memref<8x1xf32, #tpu.memory_space<vmem>>, %arg7: memref<8x1xf32, #tpu.memory_space<vmem>>, %arg8: memref<8x1xf32, #tpu.memory_space<vmem>>, %arg9: memref<8x1xf32, #tpu.memory_space<vmem>>) attributes {dimension_semantics = [#tpu.dimension_semantics<arbitrary>, #tpu.dimension_semantics<arbitrary>], iteration_bounds = array<i64: 2, 2>, scalar_prefetch = 0 : i64, scratch_operands = 4 : i64, tpu.core_type = #tpu.core_type<tc>, window_params = [{transform_indices = @transform_0, window_bounds = array<i64: 40, 256>}, {pipeline_mode = #tpu.pipeline_mode<synchronous>, transform_indices = @transform_1, window_bounds = array<i64: 8, 40>}, {pipeline_mode = #tpu.pipeline_mode<synchronous>, transform_indices = @transform_2, window_bounds = array<i64: 8, 2>}, {transform_indices = @transform_3, window_bounds = array<i64: 8, 256>}]} {
    %c0 = arith.constant 0 : index
    %c0_0 = arith.constant 0 : index
    %0 = vector.load %arg3[%c0, %c0_0] : memref<8x40xf32, #tpu.memory_space<vmem>>, vector<8x40xf32>
    %c0_1 = arith.constant 0 : index
    %c0_2 = arith.constant 0 : index
    %1 = vector.load %arg2[%c0_1, %c0_2] : memref<40x256xf32, #tpu.memory_space<vmem>>, vector<40x256xf32>
    %cst = arith.constant dense<0.000000e+00> : vector<8x256xf32>
    %2 = tpu.matmul %0, %1, %cst {dimension_numbers = #tpu.dot_dimension_numbers<[1], [0], [0], [1], [0, 0, 1, 1], [], []>} : vector<8x40xf32>, vector<40x256xf32>, vector<8x256xf32> -> vector<8x256xf32>
    %c0_i32 = arith.constant 0 : i32
    %3 = arith.cmpi eq, %arg0, %c0_i32 : i32
    %c0_i32_3 = arith.constant 0 : i32
    %4 = arith.cmpi eq, %arg1, %c0_i32_3 : i32
    %5 = arith.andi %3, %4 : i1
    %6 = arith.extui %5 : i1 to i32
    %c0_i32_4 = arith.constant 0 : i32
    %7 = arith.cmpi ne, %6, %c0_i32_4 : i32
    scf.if %7 {
      %cst_11 = arith.constant 0.000000e+00 : f32
      %19 = vector.broadcast %cst_11 : f32 to vector<8x1xf32>
      %c0_12 = arith.constant 0 : index
      %c0_13 = arith.constant 0 : index
      %20 = vector.load %arg6[%c0_12, %c0_13] : memref<8x1xf32, #tpu.memory_space<vmem>>, vector<8x1xf32>
      tpu.vector_store %arg6[%c0_12, %c0_13], %19 {strides = array<i32>} : memref<8x1xf32, #tpu.memory_space<vmem>>, vector<8x1xf32>,
      %cst_14 = arith.constant 0.000000e+00 : f32
      %21 = vector.broadcast %cst_14 : f32 to vector<8x1xf32>
      %c0_15 = arith.constant 0 : index
      %c0_16 = arith.constant 0 : index
      %22 = vector.load %arg7[%c0_15, %c0_16] : memref<8x1xf32, #tpu.memory_space<vmem>>, vector<8x1xf32>
      tpu.vector_store %arg7[%c0_15, %c0_16], %21 {strides = array<i32>} : memref<8x1xf32, #tpu.memory_space<vmem>>, vector<8x1xf32>,
    } else {
    }
    %c0_i32_5 = arith.constant 0 : i32
    %8 = arith.cmpi eq, %arg0, %c0_i32_5 : i32
    %9 = arith.extui %8 : i1 to i32
    %c0_i32_6 = arith.constant 0 : i32
    %10 = arith.cmpi ne, %9, %c0_i32_6 : i32
    scf.if %10 {
      %c0_11 = arith.constant 0 : index
      %c0_12 = arith.constant 0 : index
      %19 = vector.load %arg6[%c0_11, %c0_12] : memref<8x1xf32, #tpu.memory_space<vmem>>, vector<8x1xf32>
      %cst_13 = arith.constant dense<0.000000e+00> : vector<8xf32>
      %20 = vector.multi_reduction <add>, %2, %cst_13 [1] : vector<8x256xf32> to vector<8xf32>
      %21 = vector.shape_cast %20 : vector<8xf32> to vector<8x1xf32>
      %22 = arith.addf %19, %21 : vector<8x1xf32>
      %c0_14 = arith.constant 0 : index
      %c0_15 = arith.constant 0 : index
      %23 = vector.load %arg6[%c0_14, %c0_15] : memref<8x1xf32, #tpu.memory_space<vmem>>, vector<8x1xf32>
      tpu.vector_store %arg6[%c0_14, %c0_15], %22 {strides = array<i32>} : memref<8x1xf32, #tpu.memory_space<vmem>>, vector<8x1xf32>,
      %c0_16 = arith.constant 0 : index
      %c0_17 = arith.constant 0 : index
      %24 = vector.load %arg7[%c0_16, %c0_17] : memref<8x1xf32, #tpu.memory_space<vmem>>, vector<8x1xf32>
      %25 = arith.mulf %2, %2 : vector<8x256xf32>
      %cst_18 = arith.constant dense<0.000000e+00> : vector<8xf32>
      %26 = vector.multi_reduction <add>, %25, %cst_18 [1] : vector<8x256xf32> to vector<8xf32>
      %27 = vector.shape_cast %26 : vector<8xf32> to vector<8x1xf32>
      %28 = arith.addf %24, %27 : vector<8x1xf32>
      %c0_19 = arith.constant 0 : index
      %c0_20 = arith.constant 0 : index
      %29 = vector.load %arg7[%c0_19, %c0_20] : memref<8x1xf32, #tpu.memory_space<vmem>>, vector<8x1xf32>
      tpu.vector_store %arg7[%c0_19, %c0_20], %28 {strides = array<i32>} : memref<8x1xf32, #tpu.memory_space<vmem>>, vector<8x1xf32>,
      %c0_21 = arith.constant 0 : index
      %c0_22 = arith.constant 0 : index
      %30 = vector.load %arg5[%c0_21, %c0_22] : memref<8x256xf32, #tpu.memory_space<vmem>>, vector<8x256xf32>
      tpu.vector_store %arg5[%c0_21, %c0_22], %2 {strides = array<i32>} : memref<8x256xf32, #tpu.memory_space<vmem>>, vector<8x256xf32>,
    } else {
    }
    %c1_i32 = arith.constant 1 : i32
    %11 = arith.cmpi eq, %arg0, %c1_i32 : i32
    %c0_i32_7 = arith.constant 0 : i32
    %12 = arith.cmpi eq, %arg1, %c0_i32_7 : i32
    %13 = arith.andi %11, %12 : i1
    %14 = arith.extui %13 : i1 to i32
    %c0_i32_8 = arith.constant 0 : i32
    %15 = arith.cmpi ne, %14, %c0_i32_8 : i32
    scf.if %15 {
      %c0_11 = arith.constant 0 : index
      %c0_12 = arith.constant 0 : index
      %19 = vector.load %arg6[%c0_11, %c0_12] : memref<8x1xf32, #tpu.memory_space<vmem>>, vector<8x1xf32>
      %cst_13 = arith.constant 0.001953125 : f32
      %20 = vector.broadcast %cst_13 : f32 to vector<8x1xf32>
      %21 = arith.mulf %19, %20 : vector<8x1xf32>
      %c0_14 = arith.constant 0 : index
      %c0_15 = arith.constant 0 : index
      %22 = vector.load %arg7[%c0_14, %c0_15] : memref<8x1xf32, #tpu.memory_space<vmem>>, vector<8x1xf32>
      %cst_16 = arith.constant 0.001953125 : f32
      %23 = vector.broadcast %cst_16 : f32 to vector<8x1xf32>
      %24 = arith.mulf %22, %23 : vector<8x1xf32>
      %25 = arith.mulf %21, %21 : vector<8x1xf32>
      %26 = arith.subf %24, %25 : vector<8x1xf32>
      %cst_17 = arith.constant 9.99999974E-6 : f32
      %27 = vector.broadcast %cst_17 : f32 to vector<8x1xf32>
      %28 = arith.addf %26, %27 : vector<8x1xf32>
      %29 = math.rsqrt %28 : vector<8x1xf32>
      %c0_18 = arith.constant 0 : index
      %c0_19 = arith.constant 0 : index
      %30 = vector.load %arg4[%c0_18, %c0_19] : memref<8x2xf32, #tpu.memory_space<vmem>>, vector<8x1xf32>
      %31 = arith.mulf %30, %29 : vector<8x1xf32>
      %c0_20 = arith.constant 0 : index
      %c0_21 = arith.constant 0 : index
      %32 = vector.load %arg8[%c0_20, %c0_21] : memref<8x1xf32, #tpu.memory_space<vmem>>, vector<8x1xf32>
      tpu.vector_store %arg8[%c0_20, %c0_21], %31 {strides = array<i32>} : memref<8x1xf32, #tpu.memory_space<vmem>>, vector<8x1xf32>,
      %c0_22 = arith.constant 0 : index
      %c1 = arith.constant 1 : index
      %33 = vector.load %arg4[%c0_22, %c1] : memref<8x2xf32, #tpu.memory_space<vmem>>, vector<8x1xf32>
      %34 = arith.mulf %21, %31 : vector<8x1xf32>
      %35 = arith.subf %33, %34 : vector<8x1xf32>
      %c0_23 = arith.constant 0 : index
      %c0_24 = arith.constant 0 : index
      %36 = vector.load %arg9[%c0_23, %c0_24] : memref<8x1xf32, #tpu.memory_space<vmem>>, vector<8x1xf32>
      tpu.vector_store %arg9[%c0_23, %c0_24], %35 {strides = array<i32>} : memref<8x1xf32, #tpu.memory_space<vmem>>, vector<8x1xf32>,
    } else {
    }
    %c1_i32_9 = arith.constant 1 : i32
    %16 = arith.cmpi eq, %arg0, %c1_i32_9 : i32
    %17 = arith.extui %16 : i1 to i32
    %c0_i32_10 = arith.constant 0 : i32
    %18 = arith.cmpi ne, %17, %c0_i32_10 : i32
    scf.if %18 {
      %c0_11 = arith.constant 0 : index
      %c0_12 = arith.constant 0 : index
      %19 = vector.load %arg8[%c0_11, %c0_12] : memref<8x1xf32, #tpu.memory_space<vmem>>, vector<8x1xf32>
      %20 = vector.broadcast %19 : vector<8x1xf32> to vector<8x256xf32>
      %21 = arith.mulf %20, %2 : vector<8x256xf32>
      %c0_13 = arith.constant 0 : index
      %c0_14 = arith.constant 0 : index
      %22 = vector.load %arg9[%c0_13, %c0_14] : memref<8x1xf32, #tpu.memory_space<vmem>>, vector<8x1xf32>
      %23 = vector.broadcast %22 : vector<8x1xf32> to vector<8x256xf32>
      %24 = arith.addf %21, %23 : vector<8x256xf32>
      %cst_15 = arith.constant 0.000000e+00 : f32
      %25 = vector.broadcast %cst_15 : f32 to vector<8x256xf32>
      %26 = arith.maximumf %24, %25 : vector<8x256xf32>
      %c0_16 = arith.constant 0 : index
      %c0_17 = arith.constant 0 : index
      %27 = vector.load %arg5[%c0_16, %c0_17] : memref<8x256xf32, #tpu.memory_space<vmem>>, vector<8x256xf32>
      tpu.vector_store %arg5[%c0_16, %c0_17], %26 {strides = array<i32>} : memref<8x256xf32, #tpu.memory_space<vmem>>, vector<8x256xf32>,
    } else {
    }
    return
  }
  func.func @transform_0(%arg0: i32, %arg1: i32) -> (i32, i32) {
    %c0_i32 = arith.constant 0 : i32
    %c0_i32_0 = arith.constant 0 : i32
    return %c0_i32, %arg1 : i32, i32
  }
  func.func @transform_1(%arg0: i32, %arg1: i32) -> (i32, i32) {
    %c0_i32 = arith.constant 0 : i32
    %c0_i32_0 = arith.constant 0 : i32
    %c0_i32_1 = arith.constant 0 : i32
    return %c0_i32, %c0_i32_0 : i32, i32
  }
  func.func @transform_2(%arg0: i32, %arg1: i32) -> (i32, i32) {
    %c0_i32 = arith.constant 0 : i32
    %c0_i32_0 = arith.constant 0 : i32
    %c0_i32_1 = arith.constant 0 : i32
    return %c0_i32, %c0_i32_0 : i32, i32
  }
  func.func @transform_3(%arg0: i32, %arg1: i32) -> (i32, i32) {
    %c0_i32 = arith.constant 0 : i32
    %c0_i32_0 = arith.constant 0 : i32
    return %c0_i32, %arg1 : i32, i32
  }
}

</mosaic_0001>

<bundles_post_ra>
// kernel: tpu_custom_call.1
= control target key start
LH: loop header
LB: loop body
LE: loop exit
PB: predicated region body
PF: predicated region fallthrough
CT: control target
= control target key end

     0   :  { %8 = vsyncpa [#allocation7], 0  ;;  %s895_s0 = inlined_call_operand.hbm [shape: f32[40,512], index: 0, kind: input, shape index: {}]   ;;  %s896_s1 = inlined_call_operand.vmem [shape: f32[8,40], index: 1, kind: input, shape index: {}]   ;;  %s897_s2 = inlined_call_operand.vmem [shape: f32[8,2], index: 2, kind: input, shape index: {}]   ;;  %s898_s3 = inlined_call_operand.hbm [shape: f32[8,512], index: 3, kind: output, shape index: {}]  }
   0x1   :  { %10 = vsyncpa [#allocation7 + $0x1], 0 }
   0x2   :  { %11 = vsyncpa [#allocation8], 0 }
   0x3   :  { %13 = vsyncpa [#allocation8 + $0x1], 0  ;;  %s714_s12 = smov 0   ;;  %s716_s13 = smov 0  }
   0x4   :  { %s718_s14 = smov 0   ;;  %s720_s15 = smov 0  }
   0x5   :  { %s722_s16 = smov 0   ;;  %s724_s17 = smov 0  }
   0x6   :  { %s726_s18 = smov 0   ;;  %s728_s19 = smov 0  }
   0x7 LB: > { %s448_s20 = sadd.s32 4294967295, %s685_s19   ;;  %s449_s21 = sadd.s32 4294967294, %s685_s19   ;;  %s685_s19 = sphi %s728_s19, %s19_s19   ;;  %s681_s18 = sphi %s726_s18, %s911_s18   ;;  %s677_s17 = sphi %s724_s17, %s910_s17   ;;  %s673_s16 = sphi %s722_s16, %s909_s16   ;;  %s669_s15 = sphi %s720_s15, %s908_s15   ;;  %s665_s14 = sphi %s718_s14, %s907_s14   ;;  %s661_s13 = sphi %s716_s13, %s906_s13   ;;  %s657_s12 = sphi %s714_s12, %s905_s12  }
   0x8   : > { %s28_s22 = sadd.s32 1, %s677_s17  ;;  %s31_s23 = sadd.s32 1, %s681_s18 }
   0x9   : > { %p29_p0 = scmp.ge.s32.totalorder %s28_s22, 2  ;;  %s38_s24 = sadd.s32 1, %s665_s14 }
   0xa   : > { %p45_p1 = scmp.ne.s32.totalorder %s665_s14, %s661_s13  ;;  %p46_p2 = scmp.eq.s32.totalorder %s685_s19, 0 }
   0xb   : > { %s913_s22 = smov (%p29_p0, %s28_s22), 0  ;;  %s915_s23 = smov (!%p29_p0, %s31_s23), %s681_s18 }
   0xc   : > { %s35_s25 = ssub.s32 %s677_s17, %s913_s22  ;;  %p770_p3 = por %p46_p2, %p45_p1 }
   0xd   : > { %p33_p4 = scmp.ge.s32.totalorder %s915_s23, 2  ;;  %p36_p5 = scmp.eq.s32.totalorder %s35_s25, 0 }
   0xe   : > { %p51_p6 = scmp.ne.s32.totalorder %s661_s13, %s657_s12  ;;  %p52_p7 = scmp.eq.s32.totalorder %s448_s20, 0 }
   0xf   : > { %s917_s23 = smov (%p33_p4, %s915_s23), 0  ;;  %p117_p9 = scmp.eq.s32.totalorder %s448_s20, 3 }
  0x10   : > { %900 = sst [smem:[#allocation12_spill]] %s917_s23  ;;  %p781_p8 = por %p52_p7, %p51_p6 }
  0x11   : > { %s779_s27 = scalar_select %p36_p5, %s665_s14, %s38_s24  }
  0x12   : > { %p123_p10 = scmp.eq.s32.totalorder %s449_s21, 3  ;;  %p788_p11 = por %p117_p9, %p45_p1 }
  0x13   : > { %p481_p12 = scmp.lt.s32.totalorder %s685_s19, 4  ;;  %s149_s4 = sand.u32 1, %s665_s14  }
  0x14   : > { %p793_p13 = por %p123_p10, %p51_p6  ;;  %s467_s5 = smul.u32 80, %s149_s4 }
  0x15   : > { %s465_s6 = sshll.u32 %s677_s17, 4  ;;  %p474_p0 = pnand %p481_p12, %p770_p3 }
  0x16   : > { %s158_s9 = scalar_lea.hbm %s895_s0, %s465_s6  ;;  %s153_s11 = scalar_lea.vmem [#allocation6], %s467_s5 }
  0x17   : > { %s159_s10 = sshll.u32 %s158_s9, 4  ;;  %s161_s20 = sshll.u32 %s153_s11, 4  ;;  %s160_s10 = int_to_ptr.hbm [resolvable:$true] %s159_s10  ;;  %s162_s20 = int_to_ptr.vmem [resolvable:$true] %s161_s20 }
  0x18   : > { %s150_s21 = scalar_lea.sflag [#allocation7], %s149_s4  ;;  %s687_s24 = smov 512  }
  0x19   : > { %s688_s25 = smov 256   ;;  %s689_s23 = smov 16  }
  0x1a   : > { %476 = dma.hbm_to_vmem [thread:$0]  (!%p474_p0), %s160_s10, 1280, %s162_s20, %s150_s21, %s687_s24, %s688_s25, %s689_s23  }
  0x1b   : > { %p454_p1 = scmp.ge.s32.totalorder %s685_s19, 1  ;;  %p169_p2 = scmp.lt.s32.totalorder %s685_s19, 5 }
  0x1d   : > { %p170_p4 = pnand %p454_p1, %p169_p2 }
  0x1e   : > { %s807_s26 = sand.u32 (!%p170_p4), 1, %s661_s13  }
  0x1f   : > { %173 = sbr.rel (%p170_p4) target bundleno = 738 (0x2e2), region = 32  ;;  %s176_s5 = scalar_lea.sflag (!%p170_p4), [#allocation7], %s807_s26 }
  0x20   : > { %s468_s6 = smul.u32 (!%p170_p4), 80, %s807_s26 }
  0x22   : > { %s179_s7 = scalar_lea.vmem (!%p170_p4), [#allocation6], %s468_s6 }
  0x24   : > { %648 = dma.done.wait (%p781_p8), %s176_s5, 1280  }
  0x25   : > { %650 = vsyncadd (%p781_p8), %s176_s5, 4294966016  ;;  %s455_s23 = sshll.u32 %s807_s26, 4  ;;  %v214_v0 = vld [vmem:[%s179_s7 + $0x40] sm:$0xff]  ;;  %v215_v1 = vld [vmem:[%s179_s7 + $0x48] sm:$0xff]  ;;  %p260_p3 = scmp.eq.s32.totalorder %s673_s16, 0  ;;  %vm216_vm0 = vcmask 326656  }
  0x26   : > { %v212_v2 = vld [vmem:[%s179_s7 + $0x30] sm:$0xff]  ;;  %231 = vmatpush.msra.mxu0 %v214_v0  ;;  %251 = vmatpush.msra.mxu1 %v215_v1  ;;  %v213_v3 = vld [vmem:[%s179_s7 + $0x38] sm:$0xff]  ;;  %v210_v4 = vld [vmem:[%s179_s7 + $0x20] sm:$0xff]  ;;  %p261_p5 = scmp.eq.s32.totalorder %s669_s15, 0  ;;  %s827_s8 = scalar_lea.vmem [#allocation9], %s455_s23 }
  0x27   : > { %v211_v5 = vld [vmem:[%s179_s7 + $0x28] sm:$0xff]  ;;  %v208_v6 = vld [vmem:[%s179_s7 + $0x10] sm:$0xff]  ;;  %v209_v7 = vld [vmem:[%s179_s7 + $0x18] sm:$0xff] }
  0x28   : > { %232 = vmatpush.msra.mxu0 %v212_v2  ;;  %252 = vmatpush.msra.mxu1 %v213_v3  ;;  %v206_v8 = vld [vmem:[%s179_s7] sm:$0xff]  ;;  %v207_v9 = vld [vmem:[%s179_s7 + $0x8] sm:$0xff]  ;;  %p262_p6 = pnand %p261_p5, %p260_p3 }
  0x29   : > { %v205_v10 = vld [vmem:[%s896_s1] sm:$0xff] }
  0x2a   : > { %233 = vmatpush.msra.mxu0 %v210_v4  ;;  %253 = vmatpush.msra.mxu1 %v211_v5 }
  0x2c   : > { %234 = vmatpush.msra.mxu0 %v208_v6  ;;  %254 = vmatpush.msra.mxu1 %v209_v7 }
  0x2e   : > { %235 = vmatpush.msra.mxu0 %v206_v8  ;;  %255 = vmatpush.msra.mxu1 %v207_v9 }
  0x2f   : > { %456 = vmatmul.msk.f32.vlgmr.msra.gmra.mxu0 %vm216_vm0, %v205_v10  ;;  %457 = vmatmul.msk.f32.vlgmr.msra.gmra.mxu1 %vm216_vm0, %v205_v10 }
  0xa8   : > { %265 = sbr.rel (%p262_p6) target bundleno = 176 (0xb0), region = 40 }
  0xac   : > { %v823_v11 = vpop.f32.mrf.mxu0  ;;  %v825_v12 = vpop.f32.mrf.mxu1 }
  0xad   : > { %vm266_vm1 = vcmask 7168   ;;  %v690_v13 = vmov 0.0  }
  0xae   : > { %267 = vst.msk [vmem:[#allocation2] sm:$0xff] %vm266_vm1, %v690_v13 }
  0xaf   : > { %268 = vst.msk [vmem:[#allocation3] sm:$0xff] %vm266_vm1, %v690_v13 }
  0xb0 PF: > { %p458_p7 = scmp.ne.s32.totalorder %s673_s16, 0 }
  0xb2   : > { %271 = sbr.rel (%p458_p7) target bundleno = 312 (0x138), region = 44 }
  0xb7   : > { %v273_v14 = vadd.f32 %v825_v12, %v823_v11  ;;  %287 = vst [vmem:[%s827_s8] sm:$0xff] %v823_v11  ;;  %v280_v15 = vmul.f32 %v823_v11, %v823_v11  ;;  %v281_v16 = vmul.f32 %v825_v12, %v825_v12  ;;  %v272_v18 = vld [vmem:[#allocation2] sm:$0xff]  ;;  %vm277_vm2 = vcmask 7168   ;;  %v279_v21 = vld [vmem:[#allocation3] sm:$0xff] }
  0xb8   : > { %288 = vst [vmem:[%s827_s8 + $0x8] sm:$0xff] %v825_v12 }
  0xb9   : > { %274 = vadd.xlane.f32.xlu0 %v273_v14  ;;  %v282_v17 = vadd.f32 %v281_v16, %v280_v15 }
  0xc1   : > { %283 = vadd.xlane.f32.xlu0 %v282_v17 }
 0x12c   : > { %v275_v19 = vpop.xlane.xlu0 %274 }
 0x12d   : > { %v276_v20 = vadd.f32 %v275_v19, %v272_v18 }
 0x12f   : > { %278 = vst.msk [vmem:[#allocation2] sm:$0xff] %vm277_vm2, %v276_v20 }
 0x134   : > { %v284_v22 = vpop.xlane.xlu0 %283 }
 0x135   : > { %v285_v23 = vadd.f32 %v284_v22, %v279_v21 }
 0x137   : > { %286 = vst.msk [vmem:[#allocation3] sm:$0xff] %vm277_vm2, %v285_v23 }
 0x138 PF: > { %p289_p8 = scmp.eq.s32.totalorder %s673_s16, 1 }
 0x13a   : > { %p290_p9 = pnand %p289_p8, %p261_p5 }
 0x13b   : > { %s691_s11 = smov (!%p290_p9), 1   ;;  %s692_s20 = smov (!%p290_p9), 127  }
 0x13c   : > { %293 = sbr.rel (%p290_p9) target bundleno = 585 (0x249), region = 48 }
 0x141   : > { %v294_v24 = vld [vmem:[#allocation2] sm:$0xff]  ;;  %v296_v25 = vld [vmem:[#allocation3] sm:$0xff]  ;;  %vm313_vm6 = vcmask 7168  }
 0x142   : > { %v295_v26 = vmul.f32 0.001953125, %v294_v24  ;;  %v297_v27 = vmul.f32 0.001953125, %v296_v25  ;;  %v311_v37 = vld [vmem:[%s897_s2] sm:$0xff] }
 0x144   : > { %v298_v28 = vmul.f32 %v295_v26, %v295_v26 }
 0x146   : > { %v299_v29 = vsub.f32 %v297_v27, %v298_v28 }
 0x148   : > { %v300_v30 = vadd.f32 1e-05, %v299_v29 }
 0x14a   : > { %554 = vrsqrt.f32 %v300_v30  ;;  %vm307_vm3 = vweird.f32 %v300_v30 }
 0x150   : > { %v555_v31 = vpop.eup %554 }
 0x151   : > { %v302_v32 = vmul.f32 %v555_v31, %v300_v30  ;;  %vm308_vm4 = vweird.f32 %v555_v31 }
 0x152   : > { %vm309_vm5 = vmor %vm307_vm3, %vm308_vm4 }
 0x153   : > { %v303_v33 = vmul.f32 %v555_v31, %v302_v32 }
 0x155   : > { %v304_v34 = vmul.f32 0.5, %v303_v33 }
 0x157   : > { %v305_v35 = vsub.f32 1.5, %v304_v34 }
 0x159   : > { %v306_v36 = vmul.f32 %v555_v31, %v305_v35 }
 0x15b   : > { %v310_v38 = vsel %vm309_vm5, %v555_v31, %v306_v36 }
 0x15c   : > { %v312_v39 = vmul.f32 %v311_v37, %v310_v38 }
 0x15e   : > { %v316_v40 = vmul.f32 %v312_v39, %v295_v26  ;;  %314 = vst.msk [vmem:[#allocation4] sm:$0xff] %vm313_vm6, %v312_v39 }
 0x160   : > { %318 = vrot.lane.b32.xlu0 %v316_v40, %s691_s11 }
 0x1d2   : > { %v319_v41 = vpop.permute.xlu0 %318 }
 0x1d3   : > { %v321_v42 = vsub.f32 %v311_v37, %v319_v41 }
 0x1d5   : > { %323 = vrot.lane.b32.xlu0 %v321_v42, %s692_s20 }
 0x247   : > { %v324_v43 = vpop.permute.xlu0 %323 }
 0x248   : > { %326 = vst.msk [vmem:[#allocation5] sm:$0xff] %vm313_vm6, %v324_v43 }
 0x249 PF: > { %p459_p10 = scmp.ne.s32.totalorder %s673_s16, 1 }
 0x24b   : > { %329 = sbr.rel (%p459_p10) target bundleno = 723 (0x2d3), region = 52 }
 0x250   : > { %v330_v44 = vld [vmem:[#allocation4] sm:$0xff]  ;;  %v693_v45 = vmov 0   ;;  %v338_v46 = vld [vmem:[#allocation5] sm:$0xff] }
 0x251   : > { %556 = vset.pattern.permute.xlu0 %v693_v45 }
 0x252   : > { %333 = vperm.xlu0 %556, %v330_v44  }
 0x25a   : > { %341 = vperm.xlu0 %556, %v338_v46  }
 0x2c4   : > { %v334_v47 = vpop.permute.xlu0 %333 }
 0x2c5   : > { %v336_v48 = vmul.f32 %v334_v47, %v823_v11  ;;  %v337_v49 = vmul.f32 %v334_v47, %v825_v12 }
 0x2cc   : > { %v342_v50 = vpop.permute.xlu0 %341 }
 0x2cd   : > { %v344_v51 = vadd.f32 %v342_v50, %v336_v48  ;;  %v345_v52 = vadd.f32 %v342_v50, %v337_v49 }
 0x2cf   : > { %v346_v53 = vmax.f32 %v344_v51, 0.0  ;;  %v347_v54 = vmax.f32 %v345_v52, 0.0 }
 0x2d1   : > { %348 = vst [vmem:[%s827_s8] sm:$0xff] %v346_v53 }
 0x2d2   : > { %349 = vst [vmem:[%s827_s8 + $0x8] sm:$0xff] %v347_v54 }
 0x2d3 PF: > { %s466_s16 = sshll.u32 %s669_s15, 4  ;;  %s364_s6 = sshll.u32 %s827_s8, 4  ;;  %s365_s6 = int_to_ptr.vmem [resolvable:$true] %s364_s6 }
 0x2d4   : > { %s362_s25 = scalar_lea.hbm %s898_s3, %s466_s16  ;;  %s351_s7 = scalar_lea.sflag [#allocation8], %s807_s26 }
 0x2d5   : > { %s366_s5 = sshll.u32 %s362_s25, 4  ;;  %s607_s15 = scalar_lea.hbm %s898_s3, 32  ;;  %s367_s5 = int_to_ptr.hbm [resolvable:$true] %s366_s5 }
 0x2d6   : > { %s601_s23 = sshra.s32 %s367_s5, 4  ;;  %s602_s23 = int_to_ptr.hbm [resolvable:$true] %s601_s23 }
 0x2d7   : > { %s603_s28 = scalar_lea.hbm %s602_s23, 16  ;;  %p608_p2 = scmp.lt.s32.totalorder %s602_s23, %s898_s3 }
 0x2d8   : > { %p604_p12 = scmp.ne.s32.totalorder %s602_s23, %s603_s28  ;;  %p609_p4 = scmp.lt.s32.totalorder %s607_s15, %s603_s28 }
 0x2da   : > { %p605_p0 = pnand %p604_p12, %p788_p11  ;;  %p610_p3 = por %p609_p4, %p608_p2 }
 0x2dc   : > { %p606_p1 = pneg %p605_p0 }
 0x2de   : > { %p611_p5 = pnand %p610_p3, %p606_p1 }
 0x2e0   : > { %614 = shalt.err (!%p611_p5)
}
 0x2e1   : > { %471 = dma.vmem_to_hbm [thread:$0]  (%p788_p11), %s365_s6, 256, %s367_s5, %s351_s7  }
 0x2e2 PF: > { %p482_p6 = scmp.ge.s32.totalorder %s685_s19, 2  ;;  %s378_s26 = sand.u32 1, %s657_s12  }
 0x2e3   : > { %s379_s8 = scalar_lea.sflag [#allocation8], %s378_s26 }
 0x2e4   : > { %p478_p7 = pnand %p482_p6, %p793_p13 }
 0x2e6   : > { %p479_p8 = pneg %p478_p7 }
 0x2e8   : > { %652 = dma.done.wait (%p479_p8), %s379_s8, 256  }
 0x2e9   : > { %654 = vsyncadd (%p479_p8), %s379_s8, 4294967040  ;;  %s19_s19 = sadd.s32 1, %s685_s19   ;;  %s904_s29 = sld [smem:[#allocation12_spill]] }
 0x2ea   : > { %p16_p9 = scmp.ge.s32.totalorder %s19_s19, 6   ;;  %s905_s12 = smov %s661_s13 }
 0x2eb   : > { %s906_s13 = smov %s665_s14  ;;  %s907_s14 = smov %s779_s27 }
 0x2ec   : > { %s908_s15 = smov %s677_s17  ;;  %s909_s16 = smov %s681_s18 }
 0x2ed   : > { %s910_s17 = smov %s913_s22  ;;  %18 = sbr.rel (!%p16_p9) target bundleno = 7 (0x7), region = 93 }
 0x2ef   : > { %s911_s18 = smov %s904_s29 }
 0x2f2   :  { %385 = vsyncpa [#allocation7], 1 }
 0x2f3   :  { %387 = vsyncpa [#allocation7 + $0x1], 1 }
 0x2f4   :  { %388 = vsyncpa [#allocation8], 1 }
 0x2f5   :  { %390 = vsyncpa [#allocation8 + $0x1], 1 }

</bundles_post_ra>
